<compile_context>
chip_gen: v7x
topology: tpu7x:2x2x1
jax: 0.10.0
libtpu: 0.0.40
codegen_flags: <defaults>
</compile_context>

<pallas_src>
import functools
import math

import numpy as np
import jax
import jax.numpy as jnp
from jax.experimental import pallas as pl
from jax.experimental.pallas import tpu as pltpu


# MXU input dtype: bf16 inputs + f32 accumulation (native on v6e/v7x, also
# supported on v5e, halves DMA bytes).  Set to jnp.float32 for full precision.
MXU_DTYPE = jnp.bfloat16


# ---------------------------------------------------------------------------
# Fused Pallas kernel:
#   pred[b, tk] = ((patches[b, tk] @ w_comb) + bias[b]) @ w_head + b_head
# ---------------------------------------------------------------------------
def _fused_st_kernel(x_ref, wc_ref, rb_ref, wh_ref, hb_ref, o_ref):
    # patchify with the 1x1 input projection folded into the weight; the
    # diffusion-embedding / input-projection-bias / position-embedding
    # contributions arrive as a compact per-(batch, patch) f32 bias.
    h = jnp.dot(x_ref[...], wc_ref[...], preferred_element_type=jnp.float32)
    h = h + rb_ref[...]
    # TODO(synk): time_encoding (LinearAttentionTransformer) and
    # spatial_encoding (Block) are external dependencies not provided with the
    # module; treated as identity over the hidden features.
    pred = jnp.dot(h.astype(wh_ref.dtype), wh_ref[...],
                   preferred_element_type=jnp.float32)
    o_ref[...] = (pred + hb_ref[...]).astype(o_ref.dtype)


def fused_st_forward_pallas(patch_in, w_comb, bias, w_head, head_b):
    """Single launch for the whole STmodule matmul chain.

    patch_in : (B, T*K, hp*wp, C*p*p)  bf16 — raw patches
    w_comb   : (C*p*p, ch)             bf16 — patchify with 1x1 proj folded in
    bias     : (B, hp*wp, ch)          f32  — emb + proj-bias + pos-emb (compact)
    w_head   : (ch, p*p)               bf16
    head_b   : (1, p*p)                f32
    """
    B, TK, NP, KIN = patch_in.shape
    kin2, CH = w_comb.shape
    ch2, P2 = w_head.shape
    assert KIN == kin2 and CH == ch2
    assert bias.shape == (B, NP, CH) and head_b.shape == (1, P2)

    return pl.pallas_call(
        _fused_st_kernel,
        out_shape=jax.ShapeDtypeStruct((B, TK, NP, P2), jnp.float32),
        grid_spec=pltpu.PrefetchScalarGridSpec(
            num_scalar_prefetch=0,
            grid=(B, TK),
            in_specs=[
                # one image worth of patch rows per grid step
                pl.BlockSpec((None, None, NP, KIN), lambda b, t: (b, t, 0, 0)),
                # folded patchify weight: resident in VMEM across the grid
                pl.BlockSpec((KIN, CH), lambda b, t: (0, 0)),
                # compact bias: same block for all T*K steps of batch b
                pl.BlockSpec((None, NP, CH), lambda b, t: (b, 0, 0)),
                # head weight + bias: resident
                pl.BlockSpec((CH, P2), lambda b, t: (0, 0)),
                pl.BlockSpec((1, P2), lambda b, t: (0, 0)),
            ],
            out_specs=pl.BlockSpec((None, None, NP, P2),
                                   lambda b, t: (b, t, 0, 0)),
        ),
        compiler_params=pltpu.CompilerParams(
            dimension_semantics=("parallel", "parallel")),
    )(patch_in, w_comb, bias, w_head, head_b)


# ---------------------------------------------------------------------------
# Deterministic buffers (sinusoidal tables) — plain JAX/NumPy glue
# ---------------------------------------------------------------------------
def build_diffusion_table(num_steps, embedding_dim):
    half = embedding_dim // 2
    steps = jnp.arange(num_steps, dtype=jnp.float32)[:, None]
    freqs = 10.0 ** (jnp.arange(half, dtype=jnp.float32) / (half - 1) * 4.0)[None, :]
    table = steps * freqs
    return jnp.concatenate([jnp.sin(table), jnp.cos(table)], axis=1)  # (S, emb)


def build_position_embedding(channels, hp, wp):
    d_model = channels // 2
    pe = np.zeros((channels, hp, wp), np.float32)
    div_term = np.exp(np.arange(0.0, d_model, 2) * -(math.log(10000.0) / d_model))
    pos_w = np.arange(0.0, wp)[:, None]
    pos_h = np.arange(0.0, hp)[:, None]
    pe[0:d_model:2] = np.repeat(np.sin(pos_w * div_term).T[:, None, :], hp, axis=1)
    pe[1:d_model:2] = np.repeat(np.cos(pos_w * div_term).T[:, None, :], hp, axis=1)
    pe[d_model::2] = np.repeat(np.sin(pos_h * div_term).T[:, :, None], wp, axis=2)
    pe[d_model + 1::2] = np.repeat(np.cos(pos_h * div_term).T[:, :, None], wp, axis=2)
    # channels-last: (hp, wp, C)
    return jnp.asarray(np.transpose(pe, (1, 2, 0)))


# ---------------------------------------------------------------------------
# Parameter init (deterministic, synthetic) + one-time folding/preprocessing
# ---------------------------------------------------------------------------
def init_params(key, cfg, input_dim, mxu_dtype=MXU_DTYPE):
    ch = cfg["hidden_channels"]
    p = cfg["patch_size"]
    hp, wp = cfg["height"] // p, cfg["width"] // p
    ks = jax.random.split(key, 8)

    # raw module parameters (mirroring the PyTorch layers)
    ip_w = jax.random.normal(ks[0], (ch, input_dim), jnp.float32) * math.sqrt(2.0 / input_dim)
    ip_b = 0.01 * jax.random.normal(ks[1], (ch,), jnp.float32)
    p1_w = jax.random.normal(ks[2], (ch, ch), jnp.float32) / math.sqrt(ch)
    p1_b = jnp.zeros((ch,), jnp.float32)
    p2_w = jax.random.normal(ks[3], (ch, ch), jnp.float32) / math.sqrt(ch)
    p2_b = jnp.zeros((ch,), jnp.float32)
    pf_w = jax.random.normal(ks[4], (ch, ch, p, p), jnp.float32) / math.sqrt(ch * p * p)
    pf_b = 0.01 * jax.random.normal(ks[5], (ch,), jnp.float32)
    head_w = jax.random.normal(ks[6], (p * p, ch), jnp.float32) / math.sqrt(ch)
    head_b = jnp.zeros((p * p,), jnp.float32)

    # ---- hoisted / folded derived parameters (computed once, not per call) --
    # fold the 1x1 input projection into the patchify conv:
    #   w_comb[(c,dy,dx), co] = sum_h pf_w[co,h,dy,dx] * ip_w[h,c]
    w_comb = jnp.einsum("ohyx,hc->cyxo", pf_w, ip_w).reshape(input_dim * p * p, ch)
    # channel-summed patchify weight: projects any per-channel constant (the
    # input-projection bias and the diffusion embedding) into patch space.
    pf_sum = jnp.einsum("ohyx->ho", pf_w)                     # (ch, ch)
    patch_bias_static = pf_b + ip_b @ pf_sum                  # (ch,)
    pos_emb_flat = build_position_embedding(ch, hp, wp).reshape(hp * wp, ch)

    return {
        # diffusion-embedding projection (runs in plain XLA, B rows only)
        "p1_w": p1_w, "p1_b": p1_b, "p2_w": p2_w, "p2_b": p2_b,
        "diff_table": build_diffusion_table(cfg["num_steps"], ch),
        # folded / pre-transposed kernel operands
        "pf_sum": pf_sum,
        "patch_bias_static": patch_bias_static,
        "pos_emb_flat": pos_emb_flat,
        "w_comb": w_comb.astype(mxu_dtype),                   # (C*p*p, ch)
        "w_head": head_w.T.astype(mxu_dtype),                 # (ch, p*p)
        "head_b2": head_b.reshape(1, p * p).astype(jnp.float32),
    }


# ---------------------------------------------------------------------------
# STmodule.forward
# ---------------------------------------------------------------------------
def st_module_forward(params, cfg, x, cond_mask, diffusion_step, cond_ob,
                      low_resolution=None):
    ch = cfg["hidden_channels"]
    p = cfg["patch_size"]

    # torch.stack([x, cond_ob], dim=3): (B,T,K,H,W) -> (B,T,K,C,H,W)
    if low_resolution is None:
        inp = jnp.stack([x, cond_ob], axis=3)
    else:
        inp = jnp.stack([x, cond_ob, low_resolution], axis=3)
    B, T, K, C, H, W = inp.shape
    hp, wp = H // p, W // p
    npatch = hp * wp
    assert C * p * p == params["w_comb"].shape[0], "input dim does not match the pre definition"
    assert npatch == params["pos_emb_flat"].shape[0], "spatial size mismatch with config"

    # --- diffusion embedding: lookup + 2x (Linear + SiLU).  Only B rows, so
    #     plain XLA (a Pallas launch here would be pure overhead). -------------
    emb = params["diff_table"][diffusion_step]                 # (B, ch)
    emb = jax.nn.silu(emb @ params["p1_w"].T + params["p1_b"])
    emb = jax.nn.silu(emb @ params["p2_w"].T + params["p2_b"])

    # --- compact per-(batch, patch) bias: (input-proj bias + diffusion emb)
    #     folded through the patchify channel-sum, plus the position embedding.
    #     Shape (B, hp*wp, ch) ONLY — the T*K broadcast happens inside the
    #     kernel via the BlockSpec index_map, so no (B*T*K*hp*wp, ch) f32
    #     tensor is ever materialized or streamed through HBM. -----------------
    emb_bias = emb @ params["pf_sum"]                          # (B, ch)
    bias = (params["patch_bias_static"][None, None, :]
            + emb_bias[:, None, :]
            + params["pos_emb_flat"][None, :, :]).astype(jnp.float32)

    # --- patch extraction on the raw stacked input (tiny: B*T*K*C*H*W elems);
    #     with the 1x1 conv folded in, this is the only host-side relayout. ----
    patch_in = (inp.reshape(B, T * K, C, hp, p, wp, p)
                .transpose(0, 1, 3, 5, 2, 4, 6)                # (B,TK,hy,wx,c,dy,dx)
                .reshape(B, T * K, npatch, C * p * p)
                .astype(params["w_comb"].dtype))

    # --- single fused Pallas launch: patchify(+proj,+emb,+pos) -> head --------
    pred = fused_st_forward_pallas(patch_in, params["w_comb"], bias,
                                   params["w_head"], params["head_b2"])

    # rearrange '(b t k) (h w) (p1 p2) -> b t k (h p1) (w p2)'
    out = (pred.reshape(B, T, K, hp, wp, p, p)
           .transpose(0, 1, 2, 3, 5, 4, 6)
           .reshape(B, T, K, H, W))
    return out


# ---------------------------------------------------------------------------
if __name__ == "__main__":
    cfg = {
        "num_steps": 50,
        "hidden_channels": 32,
        "patch_size": 4,
        "height": 8,
        "width": 8,
        "num_heads": 4,
        "in_len": 2,
    }
    B, T, K, H, W = 2, 2, 2, cfg["height"], cfg["width"]
    input_dim = 2  # channels produced by torch.stack([x, cond_ob], dim=3)

    key = jax.random.PRNGKey(0)
    kx, kc, kd, kp = jax.random.split(key, 4)
    x = jax.random.normal(kx, (B, T, K, H, W), jnp.float32)
    cond_ob = jax.random.normal(kc, (B, T, K, H, W), jnp.float32)
    cond_mask = jnp.ones((B, T, K, H, W), jnp.float32)  # unused by forward (as in reference)
    diffusion_step = jax.random.randint(kd, (B,), 0, cfg["num_steps"])

    params = init_params(kp, cfg, input_dim)

    fwd = jax.jit(functools.partial(st_module_forward, params, cfg))
    out = fwd(x, cond_mask, diffusion_step, cond_ob)
    out = jax.block_until_ready(out)
    assert out.shape == (B, T, K, H, W), out.shape
    assert bool(jnp.all(jnp.isfinite(out)))
    print("KERNEL_OK")
</pallas_src>

<mosaic_0001>
module attributes {stable_mosaic.version = 11 : i64} {
  func.func @_fused_st_kernel(%arg0: i32, %arg1: i32, %arg2: memref<1x1x4x32xbf16, #tpu.memory_space<vmem>>, %arg3: memref<32x32xbf16, #tpu.memory_space<vmem>>, %arg4: memref<1x4x32xf32, #tpu.memory_space<vmem>>, %arg5: memref<32x16xbf16, #tpu.memory_space<vmem>>, %arg6: memref<1x16xf32, #tpu.memory_space<vmem>>, %arg7: memref<1x1x4x16xf32, #tpu.memory_space<vmem>>) attributes {dimension_semantics = [#tpu.dimension_semantics<parallel>, #tpu.dimension_semantics<parallel>], iteration_bounds = array<i64: 2, 4>, scalar_prefetch = 0 : i64, scratch_operands = 0 : i64, tpu.core_type = #tpu.core_type<tc>, window_params = [{transform_indices = @transform_0, window_bounds = array<i64: 1, 1, 4, 32>}, {pipeline_mode = #tpu.pipeline_mode<synchronous>, transform_indices = @transform_1, window_bounds = array<i64: 32, 32>}, {transform_indices = @transform_2, window_bounds = array<i64: 1, 4, 32>}, {pipeline_mode = #tpu.pipeline_mode<synchronous>, transform_indices = @transform_3, window_bounds = array<i64: 32, 16>}, {pipeline_mode = #tpu.pipeline_mode<synchronous>, transform_indices = @transform_4, window_bounds = array<i64: 1, 16>}, {transform_indices = @transform_5, window_bounds = array<i64: 1, 1, 4, 16>}]} {
    %c0 = arith.constant 0 : index
    %c0_0 = arith.constant 0 : index
    %c0_1 = arith.constant 0 : index
    %c0_2 = arith.constant 0 : index
    %0 = vector.load %arg2[%c0, %c0_0, %c0_1, %c0_2] : memref<1x1x4x32xbf16, #tpu.memory_space<vmem>>, vector<1x1x4x32xbf16>
    %1 = vector.shape_cast %0 : vector<1x1x4x32xbf16> to vector<4x32xbf16>
    %c0_3 = arith.constant 0 : index
    %c0_4 = arith.constant 0 : index
    %2 = vector.load %arg3[%c0_3, %c0_4] : memref<32x32xbf16, #tpu.memory_space<vmem>>, vector<32x32xbf16>
    %cst = arith.constant dense<0.000000e+00> : vector<4x32xf32>
    %3 = tpu.matmul %1, %2, %cst {dimension_numbers = #tpu.dot_dimension_numbers<[1], [0], [0], [1], [0, 0, 1, 1], [], []>} : vector<4x32xbf16>, vector<32x32xbf16>, vector<4x32xf32> -> vector<4x32xf32>
    %c0_5 = arith.constant 0 : index
    %c0_6 = arith.constant 0 : index
    %c0_7 = arith.constant 0 : index
    %4 = vector.load %arg4[%c0_5, %c0_6, %c0_7] : memref<1x4x32xf32, #tpu.memory_space<vmem>>, vector<1x4x32xf32>
    %5 = vector.shape_cast %4 : vector<1x4x32xf32> to vector<4x32xf32>
    %6 = arith.addf %3, %5 : vector<4x32xf32>
    %7 = arith.truncf %6 : vector<4x32xf32> to vector<4x32xbf16>
    %c0_8 = arith.constant 0 : index
    %c0_9 = arith.constant 0 : index
    %8 = vector.load %arg5[%c0_8, %c0_9] : memref<32x16xbf16, #tpu.memory_space<vmem>>, vector<32x16xbf16>
    %cst_10 = arith.constant dense<0.000000e+00> : vector<4x16xf32>
    %9 = tpu.matmul %7, %8, %cst_10 {dimension_numbers = #tpu.dot_dimension_numbers<[1], [0], [0], [1], [0, 0, 1, 1], [], []>} : vector<4x32xbf16>, vector<32x16xbf16>, vector<4x16xf32> -> vector<4x16xf32>
    %c0_11 = arith.constant 0 : index
    %c0_12 = arith.constant 0 : index
    %10 = vector.load %arg6[%c0_11, %c0_12] : memref<1x16xf32, #tpu.memory_space<vmem>>, vector<1x16xf32>
    %11 = vector.broadcast %10 : vector<1x16xf32> to vector<4x16xf32>
    %12 = arith.addf %9, %11 : vector<4x16xf32>
    %c0_13 = arith.constant 0 : index
    %c0_14 = arith.constant 0 : index
    %c0_15 = arith.constant 0 : index
    %c0_16 = arith.constant 0 : index
    %13 = vector.load %arg7[%c0_13, %c0_14, %c0_15, %c0_16] : memref<1x1x4x16xf32, #tpu.memory_space<vmem>>, vector<1x1x4x16xf32>
    %14 = vector.shape_cast %13 : vector<1x1x4x16xf32> to vector<4x16xf32>
    %15 = vector.shape_cast %12 : vector<4x16xf32> to vector<1x1x4x16xf32>
    tpu.vector_store %arg7[%c0_13, %c0_14, %c0_15, %c0_16], %15 {strides = array<i32>} : memref<1x1x4x16xf32, #tpu.memory_space<vmem>>, vector<1x1x4x16xf32>,
    return
  }
  func.func @transform_0(%arg0: i32, %arg1: i32) -> (i32, i32, i32, i32) {
    %c0_i32 = arith.constant 0 : i32
    %c0_i32_0 = arith.constant 0 : i32
    %c0_i32_1 = arith.constant 0 : i32
    return %arg0, %arg1, %c0_i32, %c0_i32_0 : i32, i32, i32, i32
  }
  func.func @transform_1(%arg0: i32, %arg1: i32) -> (i32, i32) {
    %c0_i32 = arith.constant 0 : i32
    %c0_i32_0 = arith.constant 0 : i32
    %c0_i32_1 = arith.constant 0 : i32
    return %c0_i32, %c0_i32_0 : i32, i32
  }
  func.func @transform_2(%arg0: i32, %arg1: i32) -> (i32, i32, i32) {
    %c0_i32 = arith.constant 0 : i32
    %c0_i32_0 = arith.constant 0 : i32
    %c0_i32_1 = arith.constant 0 : i32
    return %arg0, %c0_i32, %c0_i32_0 : i32, i32, i32
  }
  func.func @transform_3(%arg0: i32, %arg1: i32) -> (i32, i32) {
    %c0_i32 = arith.constant 0 : i32
    %c0_i32_0 = arith.constant 0 : i32
    %c0_i32_1 = arith.constant 0 : i32
    return %c0_i32, %c0_i32_0 : i32, i32
  }
  func.func @transform_4(%arg0: i32, %arg1: i32) -> (i32, i32) {
    %c0_i32 = arith.constant 0 : i32
    %c0_i32_0 = arith.constant 0 : i32
    %c0_i32_1 = arith.constant 0 : i32
    return %c0_i32, %c0_i32_0 : i32, i32
  }
  func.func @transform_5(%arg0: i32, %arg1: i32) -> (i32, i32, i32, i32) {
    %c0_i32 = arith.constant 0 : i32
    %c0_i32_0 = arith.constant 0 : i32
    %c0_i32_1 = arith.constant 0 : i32
    return %arg0, %arg1, %c0_i32, %c0_i32_0 : i32, i32, i32, i32
  }
}

</mosaic_0001>

<bundles_post_ra>
// kernel: st_module_forward.1
= control target key start
LH: loop header
LB: loop body
LE: loop exit
PB: predicated region body
PF: predicated region fallthrough
CT: control target
= control target key end

     0   :  { %s662_s18 = smov 0   ;;  %s664_s19 = smov 0   ;;  %s735_s0 = inlined_call_operand.vmem [shape: bf16[2,4,4,32], index: 0, kind: input, shape index: {}]   ;;  %s736_s1 = inlined_call_operand.vmem [shape: bf16[32,32], index: 1, kind: input, shape index: {}]   ;;  %s737_s2 = inlined_call_operand.vmem [shape: f32[2,4,32], index: 2, kind: input, shape index: {}]   ;;  %s738_s3 = inlined_call_operand.vmem [shape: bf16[32,16], index: 3, kind: input, shape index: {}]   ;;  %s739_s4 = inlined_call_operand.vmem [shape: f32[1,16], index: 4, kind: input, shape index: {}]   ;;  %s740_s5 = inlined_call_operand.vmem [shape: f32[2,4,4,16], index: 5, kind: output, shape index: {}]  }
   0x1   :  { %s666_s20 = smov 0   ;;  %s668_s21 = smov 0  }
   0x2   :  { %s670_s22 = smov 0  }
   0x3 LB: > { %s24_s23 = sadd.s32 1, %s620_s20  ;;  %s27_s24 = sadd.s32 1, %s624_s21  ;;  %s628_s22 = sphi %s670_s22, %s15_s22   ;;  %s624_s21 = sphi %s668_s21, %s744_s21   ;;  %s620_s20 = sphi %s666_s20, %s743_s20   ;;  %s616_s19 = sphi %s664_s19, %s742_s19   ;;  %s612_s18 = sphi %s662_s18, %s741_s18  }
   0x4   : > { %p25_p0 = scmp.ge.s32.totalorder %s24_s23, 4  ;;  %p507_p1 = scmp.ge.s32.totalorder %s628_s22, 1 }
   0x5   : > { %p215_p2 = scmp.lt.s32.totalorder %s628_s22, 9 }
   0x6   : > { %s746_s23 = smov (%p25_p0, %s24_s23), 0  ;;  %s748_s24 = smov (!%p25_p0, %s27_s24), %s624_s21 }
   0x7   : > { %p216_p3 = pnand %p507_p1, %p215_p2  ;;  %p29_p4 = scmp.ge.s32.totalorder %s748_s24, 2 }
   0x8   : > { %v586_v0 = vld [vmem:[%s736_s1] sm:$0xff] (!%p216_p3)   ;;  %v630_v1 = vmov (!%p216_p3), 0.0   ;;  %v587_v2 = vld [vmem:[%s736_s1 + $0x8] sm:$0xff] (!%p216_p3)   ;;  %vm631_vm0 = vmmov (!%p216_p3), 0   ;;  %p253_p5 = scmp.lt.s32.totalorder (!%p216_p3), %s616_s19, 1  ;;  %p255_p6 = scmp.lt.s32.totalorder (!%p216_p3), %s612_s18, 3 }
   0x9   : > { %s750_s24 = smov (%p29_p4, %s748_s24), 0  ;;  %219 = sbr.rel (%p216_p3) target bundleno = 453 (0x1c5), region = 40 }
   0xa   : > { %528 = vmatprep.subr.bf16.mxu0 (!%p216_p3), %v630_v1  ;;  %536 = vmatprep.subr.bf16.mxu1 (!%p216_p3), %v630_v1  ;;  %v588_v3 = vld [vmem:[%s738_s3] sm:$0xff] (!%p216_p3)   ;;  %vm292_vm1 = vcmask (!%p216_p3), 261120   ;;  %v589_v5 = vld [vmem:[%s738_s3 + $0x8] sm:$0xff] (!%p216_p3)   ;;  %vm403_vm2 = vcmask (!%p216_p3), 125952  }
   0xb   : > { %529 = vmatpush3.bf16.msra.mxu0 (!%p216_p3), %v586_v0  ;;  %532 = vmatprep.mubr.msk.bf16.mxu0 (!%p216_p3), %vm631_vm0, %v630_v1  ;;  %v516_v13 = vld [vmem:[%s739_s4] ss:$0 sm:$0xff] (!%p216_p3) }
   0xc   : > { %530 = vmatprep.subr.bf16.mxu0 (!%p216_p3), %v630_v1  ;;  %540 = vmatprep.mubr.msk.bf16.mxu1 (!%p216_p3), %vm631_vm0, %v630_v1 }
   0xd   : > { %537 = vmatpush3.bf16.msra.mxu1 (!%p216_p3), %v588_v3 }
   0xe   : > { %538 = vmatprep.subr.bf16.mxu1 (!%p216_p3), %v630_v1 }
   0xf   : > { %531 = vmatpush3.bf16.msra.mxu0 (!%p216_p3), %v587_v2 }
  0x10   : > { %s752_s19 = smov (!%p253_p5, %s616_s19), 1  ;;  %s754_s18 = smov (!%p255_p6, %s612_s18), 3 }
  0x11   : > { %s508_s6 = sshll.u32 %s752_s19, 2  ;;  %539 = vmatpush3.bf16.msra.mxu1 %v589_v5 }
  0x12   : > { %s258_s7 = sadd.s32 %s508_s6, %s754_s18  ;;  %s264_s16 = scalar_lea.vmem %s737_s2, %s508_s6 }
  0x13   : > { %s509_s8 = sshll.u32 %s258_s7, 1  ;;  %v279_v6 = vld [vmem:[%s264_s16] sm:$0xf]  ;;  %s512_s17 = sshll.u32 %s258_s7, 2 }
  0x14   : > { %s260_s11 = scalar_lea.vmem %s735_s0, %s509_s8  ;;  %s272_s27 = scalar_lea.vmem %s740_s5, %s512_s17 }
  0x15   : > { %v274_v4 = vld [vmem:[%s260_s11] sm:$0x3] }
  0x16   : > { %533 = vmatmul.mubr.msk.bf16.vlgmr.msra.gmra.mrb[0].mxu0 %vm292_vm1, %v274_v4 }
  0xe9   : > { %v330_v7 = vpop.f32.mrb[0].mxu0 }
  0xea   : > { %v331_v8 = vadd.f32 %v330_v7, %v279_v6  ;;  %v534_v9 = vpop.f32.mrb[1].mxu0 }
  0xeb   : > { %v333_v10 = vpop.f32.mrb[2].mxu0 }
  0xec   : > { %v336_v11 = vpack.c.bf16 %v331_v8, %v331_v8  ;;  %v535_v12 = vpop.f32.mrb[3].mxu0 }
  0xee   : > { %541 = vmatmul.mubr.msk.bf16.vlgmr.msra.gmra.mrb[0].mxu1 %vm292_vm1, %v336_v11 }
 0x1c1   : > { %v397_v14 = vpop.f32.mrb[0].mxu1 }
 0x1c2   : > { %v398_v15 = vadd.f32 %v516_v13, %v397_v14  ;;  %v542_v16 = vpop.f32.mrb[1].mxu1 }
 0x1c3   : > { %v400_v17 = vpop.f32.mrb[2].mxu1 }
 0x1c4   : > { %404 = vst.msk [vmem:[%s272_s27] sm:$0xf] %vm403_vm2, %v398_v15  ;;  %v543_v18 = vpop.f32.mrb[3].mxu1 }
 0x1c5 PF: > { %s15_s22 = sadd.s32 1, %s628_s22   ;;  %s741_s18 = smov %s620_s20 }
 0x1c6   : > { %p12_p7 = scmp.ge.s32.totalorder %s15_s22, 10   ;;  %s742_s19 = smov %s624_s21 }
 0x1c7   : > { %s743_s20 = smov %s746_s23  ;;  %s744_s21 = smov %s750_s24 }
 0x1c8   :  { %14 = sbr.rel (!%p12_p7) target bundleno = 3 (0x3), region = 73 }

</bundles_post_ra>
